<compile_context>
chip_gen: v5e
topology: v5e:2x2
jax: 0.10.0
libtpu: 0.0.40
codegen_flags: <defaults>
</compile_context>

<pallas_src>
import math

import jax
import jax.numpy as jnp
from jax.experimental import pallas as pl
from jax.experimental.pallas import tpu as pltpu


def _round_up(x, m):
    return ((x + m - 1) // m) * m


def _ts_gcn_kernel(t_ref, a_ref, x_ref, w_ref, b_ref, o_ref, acc_ref):
    """One (row-tile i, k-tile) step of  (A_hat @ (X @ W) + b) * t."""
    k = pl.program_id(1)

    @pl.when(k == 0)
    def _init():
        acc_ref[...] = jnp.zeros_like(acc_ref)

    # Per-K-tile projection: X[k_tile] @ W  -> [tk, C_pad] (f32 accumulate on MXU).
    xw = jnp.dot(x_ref[...], w_ref[...], preferred_element_type=jnp.float32)
    # Accumulate A_hat[i_tile, k_tile] @ XW[k_tile]  -> [tm, C_pad].
    acc_ref[...] += jnp.dot(
        a_ref[...], xw.astype(a_ref.dtype), preferred_element_type=jnp.float32
    )

    # Epilogue only on the last K step: bias + temperature scaling (VPU work
    # rides in slack; broadcasts happen once per row tile, not per K step).
    @pl.when(k == pl.num_programs(1) - 1)
    def _finalize():
        o_ref[...] = ((acc_ref[...] + b_ref[...]) * t_ref[0]).astype(o_ref.dtype)


def _build_normalized_adjacency(edge_index, num_nodes, edge_weight=None):
    """Plain-JAX glue: dense D^-1/2 (A + I) D^-1/2 from a [2, E] edge_index.

    Note: no symmetrization is applied (matches the synthetic base model used
    here); PyG GCNConv on a directed edge list would differ slightly.
    """
    src, dst = edge_index[0], edge_index[1]
    if edge_weight is None:
        edge_weight = jnp.ones(src.shape[0], dtype=jnp.float32)
    adj = jnp.zeros((num_nodes, num_nodes), dtype=jnp.float32)
    adj = adj.at[src, dst].add(edge_weight)
    adj = adj + jnp.eye(num_nodes, dtype=jnp.float32)  # self-loops
    deg = jnp.sum(adj, axis=1)
    d_inv_sqrt = jnp.where(deg > 0, 1.0 / jnp.sqrt(deg), 0.0)
    return adj * d_inv_sqrt[:, None] * d_inv_sqrt[None, :]


def temperature_scaling_forward(
    x,
    edge_index,
    w,
    b,
    temperature,
    edge_weight=None,
    *,
    tm=512,
    tk=512,
    compute_dtype=jnp.bfloat16,
):
    """Forward pass equivalent to Temperature_Scalling(base_model)(x, edge_index)."""
    n, f_in = x.shape
    c = w.shape[1]

    a_hat = _build_normalized_adjacency(edge_index, n, edge_weight)

    # ---- padding / tile sizing -------------------------------------------
    n128 = _round_up(n, 128)
    tm = min(tm, n128)                      # row tile (sublane axis of A)
    tk = min(tk, n128)                      # contraction tile (lane axis of A)
    n_pad = _round_up(n, (tm * tk) // math.gcd(tm, tk))
    f_pad = _round_up(f_in, 128)
    c_pad = _round_up(c, 128)               # lane-dense output stores

    a_pad = jnp.pad(a_hat, ((0, n_pad - n), (0, n_pad - n))).astype(compute_dtype)
    x_pad = jnp.pad(x.astype(jnp.float32), ((0, n_pad - n), (0, f_pad - f_in))).astype(
        compute_dtype
    )
    w_pad = jnp.pad(w.astype(jnp.float32), ((0, f_pad - f_in), (0, c_pad - c))).astype(
        compute_dtype
    )
    b_pad = jnp.pad(b.astype(jnp.float32), (0, c_pad - c)).reshape(1, c_pad)
    t = temperature.astype(jnp.float32)

    grid = (n_pad // tm, n_pad // tk)       # (row tiles, K tiles) — reduction last

    out_pad = pl.pallas_call(
        _ts_gcn_kernel,
        out_shape=jax.ShapeDtypeStruct((n_pad, c_pad), jnp.float32),
        grid_spec=pltpu.PrefetchScalarGridSpec(
            num_scalar_prefetch=0,
            grid=grid,
            in_specs=[
                pl.BlockSpec(memory_space=pltpu.SMEM),              # temperature (1,)
                pl.BlockSpec((tm, tk), lambda i, k: (i, k)),        # A_hat tile
                pl.BlockSpec((tk, f_pad), lambda i, k: (k, 0)),     # X K-tile
                pl.BlockSpec((f_pad, c_pad), lambda i, k: (0, 0)),  # W (resident)
                pl.BlockSpec((1, c_pad), lambda i, k: (0, 0)),      # bias (resident)
            ],
            out_specs=pl.BlockSpec((tm, c_pad), lambda i, k: (i, 0)),
            scratch_shapes=[pltpu.VMEM((tm, c_pad), jnp.float32)],  # f32 accumulator
        ),
        compiler_params=pltpu.CompilerParams(
            dimension_semantics=("parallel", "arbitrary"),
            vmem_limit_bytes=32 * 1024 * 1024,  # safe on v5e/v6e/v7x for these tiles
        ),
    )(t, a_pad, x_pad, w_pad, b_pad)

    return out_pad[:n, :c]


if __name__ == "__main__":
    key = jax.random.PRNGKey(0)
    k_x, k_e, k_w, k_b = jax.random.split(key, 4)

    # Small synthetic graph (big enough that the 128x128 test tiles give a
    # real 2x2 grid and exercise the K-accumulation path).
    N, F_IN, C, E = 200, 32, 4, 600

    x = jax.random.normal(k_x, (N, F_IN), dtype=jnp.float32)
    edge_index = jax.random.randint(k_e, (2, E), 0, N, dtype=jnp.int32)

    # Deterministic synthetic (frozen) base-model parameters.
    w = jax.random.normal(k_w, (F_IN, C), dtype=jnp.float32) * 0.1
    b = jax.random.normal(k_b, (C,), dtype=jnp.float32) * 0.01
    # Temperature_Scalling.__init__ uses torch.ones(1); a non-unit value is
    # used here so the scaling path is actually verified.
    temperature = jnp.full((1,), 1.7, dtype=jnp.float32)

    out = temperature_scaling_forward(
        x, edge_index, w, b, temperature, tm=128, tk=128
    )
    out = jax.block_until_ready(out)

    # Reference (pure JAX) mirroring the bf16 boundary casts + f32 accumulation.
    a_hat = _build_normalized_adjacency(edge_index, N)
    a_bf = a_hat.astype(jnp.bfloat16).astype(jnp.float32)
    x_bf = x.astype(jnp.bfloat16).astype(jnp.float32)
    w_bf = w.astype(jnp.bfloat16).astype(jnp.float32)
    xw_ref = (x_bf @ w_bf).astype(jnp.bfloat16).astype(jnp.float32)
    ref = (a_bf @ xw_ref + b.reshape(1, C)) * temperature[0]

    assert out.shape == (N, C)
    max_err = float(jnp.max(jnp.abs(out - ref)))
    assert jnp.allclose(out, ref, atol=1e-2, rtol=1e-2), f"max_err={max_err}"

    print("KERNEL_OK")
</pallas_src>

<mosaic_0001>
module attributes {stable_mosaic.version = 11 : i64} {
  func.func @_ts_gcn_kernel(%arg0: i32, %arg1: i32, %arg2: memref<1xf32, #tpu.memory_space<smem>>, %arg3: memref<128x128xbf16, #tpu.memory_space<vmem>>, %arg4: memref<128x128xbf16, #tpu.memory_space<vmem>>, %arg5: memref<128x128xbf16, #tpu.memory_space<vmem>>, %arg6: memref<1x128xf32, #tpu.memory_space<vmem>>, %arg7: memref<128x128xf32, #tpu.memory_space<vmem>>, %arg8: memref<128x128xf32, #tpu.memory_space<vmem>>) attributes {dimension_semantics = [#tpu.dimension_semantics<parallel>, #tpu.dimension_semantics<arbitrary>], iteration_bounds = array<i64: 2, 2>, scalar_prefetch = 0 : i64, scratch_operands = 1 : i64, tpu.core_type = #tpu.core_type<tc>, window_params = [{transform_indices = @transform_0, window_bounds = array<i64: 1>}, {transform_indices = @transform_1, window_bounds = array<i64: 128, 128>}, {transform_indices = @transform_2, window_bounds = array<i64: 128, 128>}, {pipeline_mode = #tpu.pipeline_mode<synchronous>, transform_indices = @transform_3, window_bounds = array<i64: 128, 128>}, {pipeline_mode = #tpu.pipeline_mode<synchronous>, transform_indices = @transform_4, window_bounds = array<i64: 1, 128>}, {transform_indices = @transform_5, window_bounds = array<i64: 128, 128>}]} {
    %c0_i32 = arith.constant 0 : i32
    %0 = arith.cmpi eq, %arg1, %c0_i32 : i32
    %1 = arith.extui %0 : i1 to i32
    %c0_i32_0 = arith.constant 0 : i32
    %2 = arith.cmpi ne, %1, %c0_i32_0 : i32
    scf.if %2 {
      %cst_12 = arith.constant 0.000000e+00 : f32
      %15 = vector.broadcast %cst_12 : f32 to vector<128x128xf32>
      %c0_13 = arith.constant 0 : index
      %c0_14 = arith.constant 0 : index
      %16 = vector.load %arg8[%c0_13, %c0_14] : memref<128x128xf32, #tpu.memory_space<vmem>>, vector<128x128xf32>
      tpu.vector_store %arg8[%c0_13, %c0_14], %15 {strides = array<i32>} : memref<128x128xf32, #tpu.memory_space<vmem>>, vector<128x128xf32>,
    } else {
    }
    %c0 = arith.constant 0 : index
    %c0_1 = arith.constant 0 : index
    %3 = vector.load %arg4[%c0, %c0_1] : memref<128x128xbf16, #tpu.memory_space<vmem>>, vector<128x128xbf16>
    %c0_2 = arith.constant 0 : index
    %c0_3 = arith.constant 0 : index
    %4 = vector.load %arg5[%c0_2, %c0_3] : memref<128x128xbf16, #tpu.memory_space<vmem>>, vector<128x128xbf16>
    %cst = arith.constant dense<0.000000e+00> : vector<128x128xf32>
    %5 = tpu.matmul %3, %4, %cst {dimension_numbers = #tpu.dot_dimension_numbers<[1], [0], [0], [1], [0, 0, 1, 1], [], []>} : vector<128x128xbf16>, vector<128x128xbf16>, vector<128x128xf32> -> vector<128x128xf32>
    %c0_4 = arith.constant 0 : index
    %c0_5 = arith.constant 0 : index
    %6 = vector.load %arg8[%c0_4, %c0_5] : memref<128x128xf32, #tpu.memory_space<vmem>>, vector<128x128xf32>
    %c0_6 = arith.constant 0 : index
    %c0_7 = arith.constant 0 : index
    %7 = vector.load %arg3[%c0_6, %c0_7] : memref<128x128xbf16, #tpu.memory_space<vmem>>, vector<128x128xbf16>
    %8 = arith.truncf %5 : vector<128x128xf32> to vector<128x128xbf16>
    %cst_8 = arith.constant dense<0.000000e+00> : vector<128x128xf32>
    %9 = tpu.matmul %7, %8, %cst_8 {dimension_numbers = #tpu.dot_dimension_numbers<[1], [0], [0], [1], [0, 0, 1, 1], [], []>} : vector<128x128xbf16>, vector<128x128xbf16>, vector<128x128xf32> -> vector<128x128xf32>
    %10 = arith.addf %6, %9 : vector<128x128xf32>
    %c0_9 = arith.constant 0 : index
    %c0_10 = arith.constant 0 : index
    %11 = vector.load %arg8[%c0_9, %c0_10] : memref<128x128xf32, #tpu.memory_space<vmem>>, vector<128x128xf32>
    tpu.vector_store %arg8[%c0_9, %c0_10], %10 {strides = array<i32>} : memref<128x128xf32, #tpu.memory_space<vmem>>, vector<128x128xf32>,
    %c1_i32 = arith.constant 1 : i32
    %12 = arith.cmpi eq, %arg1, %c1_i32 : i32
    %13 = arith.extui %12 : i1 to i32
    %c0_i32_11 = arith.constant 0 : i32
    %14 = arith.cmpi ne, %13, %c0_i32_11 : i32
    scf.if %14 {
      %c0_12 = arith.constant 0 : index
      %c0_13 = arith.constant 0 : index
      %15 = vector.load %arg8[%c0_12, %c0_13] : memref<128x128xf32, #tpu.memory_space<vmem>>, vector<128x128xf32>
      %c0_14 = arith.constant 0 : index
      %c0_15 = arith.constant 0 : index
      %16 = vector.load %arg6[%c0_14, %c0_15] : memref<1x128xf32, #tpu.memory_space<vmem>>, vector<1x128xf32>
      %17 = vector.broadcast %16 : vector<1x128xf32> to vector<128x128xf32>
      %18 = arith.addf %15, %17 : vector<128x128xf32>
      %c0_16 = arith.constant 0 : index
      %19 = memref.load %arg2[%c0_16] : memref<1xf32, #tpu.memory_space<smem>>
      %20 = vector.broadcast %19 : f32 to vector<128x128xf32>
      %21 = arith.mulf %18, %20 : vector<128x128xf32>
      %c0_17 = arith.constant 0 : index
      %c0_18 = arith.constant 0 : index
      %22 = vector.load %arg7[%c0_17, %c0_18] : memref<128x128xf32, #tpu.memory_space<vmem>>, vector<128x128xf32>
      tpu.vector_store %arg7[%c0_17, %c0_18], %21 {strides = array<i32>} : memref<128x128xf32, #tpu.memory_space<vmem>>, vector<128x128xf32>,
    } else {
    }
    return
  }
  func.func @transform_0(%arg0: i32, %arg1: i32) -> i32 {
    %c0_i32 = arith.constant 0 : i32
    %c0_i32_0 = arith.constant 0 : i32
    return %c0_i32 : i32
  }
  func.func @transform_1(%arg0: i32, %arg1: i32) -> (i32, i32) {
    %c0_i32 = arith.constant 0 : i32
    return %arg0, %arg1 : i32, i32
  }
  func.func @transform_2(%arg0: i32, %arg1: i32) -> (i32, i32) {
    %c0_i32 = arith.constant 0 : i32
    %c0_i32_0 = arith.constant 0 : i32
    return %arg1, %c0_i32 : i32, i32
  }
  func.func @transform_3(%arg0: i32, %arg1: i32) -> (i32, i32) {
    %c0_i32 = arith.constant 0 : i32
    %c0_i32_0 = arith.constant 0 : i32
    %c0_i32_1 = arith.constant 0 : i32
    return %c0_i32, %c0_i32_0 : i32, i32
  }
  func.func @transform_4(%arg0: i32, %arg1: i32) -> (i32, i32) {
    %c0_i32 = arith.constant 0 : i32
    %c0_i32_0 = arith.constant 0 : i32
    %c0_i32_1 = arith.constant 0 : i32
    return %c0_i32, %c0_i32_0 : i32, i32
  }
  func.func @transform_5(%arg0: i32, %arg1: i32) -> (i32, i32) {
    %c0_i32 = arith.constant 0 : i32
    %c0_i32_0 = arith.constant 0 : i32
    return %arg0, %c0_i32 : i32, i32
  }
}

</mosaic_0001>

<bundles_post_ra>
// kernel: tpu_custom_call.1
= control target key start
LH: loop header
LB: loop body
LE: loop exit
PB: predicated region body
PF: predicated region fallthrough
CT: control target
= control target key end

     0   :  { %s1807_s0 = inlined_call_operand.<no memory space> [shape: f32[1], index: 0, kind: input, shape index: {}]   ;;  %s1808_s1 = inlined_call_operand.hbm [shape: bf16[256,256], index: 1, kind: input, shape index: {}]   ;;  %s1809_s2 = inlined_call_operand.hbm [shape: bf16[256,128], index: 2, kind: input, shape index: {}]   ;;  %s1810_s3 = inlined_call_operand.hbm [shape: bf16[128,128], index: 3, kind: input, shape index: {}]   ;;  %s1811_s4 = inlined_call_operand.vmem [shape: f32[1,128], index: 4, kind: input, shape index: {}]   ;;  %s1812_s5 = inlined_call_operand.hbm [shape: f32[256,128], index: 5, kind: output, shape index: {}]  }
   0x1   :  { %1827 = sst [smem:[#allocation26_spill]] %s1808_s1 }
   0x2   :  { %1828 = sst [smem:[#allocation27_spill]] %s1810_s3 }
   0x3   :  { %1829 = sst [smem:[#allocation28_spill]] %s1811_s4 }
   0x4   :  { %1830 = sst [smem:[#allocation29_spill]] %s1812_s5 }
   0x5   :  { %10 = sst [smem:[#allocation3]] %s1807_s0 }
   0x6   :  { %11 = vsyncpa [#allocation5], 0 }
   0x7   :  { %13 = vsyncpa [#allocation5 + $0x1], 0 }
   0x8   :  { %14 = vsyncpa [#allocation8], 0 }
   0x9   :  { %16 = vsyncpa [#allocation8 + $0x1], 0 }
   0xa   :  { %17 = vsyncpa [#allocation6], 0 }
   0xb   :  { %19 = vsyncpa [#allocation6 + $0x1], 0  ;;  %s1495_s20 = smov 0   ;;  %s1497_s21 = smov 0  }
   0xc   :  { %s1499_s22 = smov 0   ;;  %s1501_s23 = smov 0  }
   0xd   :  { %s1503_s24 = smov 0   ;;  %s1505_s25 = smov 0  }
   0xe   :  { %s1507_s26 = smov 0   ;;  %s1509_s0 = smov 0  }
   0xf   :  { %s1511_s27 = smov 0   ;;  %s1513_s28 = smov 0  }
  0x10   :  { %s1515_s29 = smov 0   ;;  %s1517_s30 = smov 0  }
  0x11   :  { %s1519_s6 = smov 0   ;;  %s1521_s7 = smov 0  }
  0x12 LB: > { %1831 = sst [smem:[#allocation15_spill]] %s1401_s20  ;;  %s1562_s8 = sadd.s32 4294967295, %s1453_s7   ;;  %s1453_s7 = sphi %s1521_s7, %s25_s7   ;;  %s1449_s6 = sphi %s1519_s6, %s1876_s6   ;;  %s1445_s30 = sphi %s1517_s30, %s1875_s30   ;;  %s1441_s29 = sphi %s1515_s29, %s1864_s29   ;;  %s1437_s28 = sphi %s1513_s28, %s1874_s28   ;;  %s1433_s27 = sphi %s1511_s27, %s1863_s27   ;;  %s1429_s0 = sphi %s1509_s0, %s1873_s0   ;;  %s1425_s26 = sphi %s1507_s26, %s1872_s26   ;;  %s1421_s25 = sphi %s1505_s25, %s1871_s25   ;;  %s1417_s24 = sphi %s1503_s24, %s1870_s24   ;;  %s1413_s23 = sphi %s1501_s23, %s1869_s23   ;;  %s1409_s22 = sphi %s1499_s22, %s1861_s22   ;;  %s1405_s21 = sphi %s1497_s21, %s1868_s21   ;;  %s1401_s20 = sphi %s1495_s20, %s1867_s20  }
  0x13   : > { %1832 = sst [smem:[#allocation16_spill]] %s1409_s22  ;;  %s898_s9 = sadd.s32 4294967294, %s1453_s7  }
  0x14   : > { %1833 = sst [smem:[#allocation17_spill]] %s1433_s27  ;;  %p80_p0 = scmp.ne.s32.totalorder %s1429_s0, %s1425_s26 }
  0x15   : > { %1834 = sst [smem:[#allocation18_spill]] %s1441_s29  ;;  %p81_p1 = scmp.eq.s32.totalorder %s1562_s8, 0 }
  0x16   : > { %1835 = sst [smem:[#allocation19_spill]] %s1449_s6  ;;  %p106_p2 = scmp.ne.s32.totalorder %s1417_s24, %s1413_s23 }
  0x17   : > { %p171_p3 = scmp.ne.s32.totalorder %s1409_s22, %s1405_s21  ;;  %p1572_p4 = por %p81_p1, %p80_p0 }
  0x18   : > { %p172_p5 = scmp.eq.s32.totalorder %s1562_s8, 3  ;;  %p1579_p6 = por %p106_p2, %p81_p1 }
  0x19   : > { %p177_p7 = scmp.ne.s32.totalorder %s1405_s21, %s1401_s20  ;;  %p178_p9 = scmp.eq.s32.totalorder %s898_s9, 3 }
  0x1a   : > { %p1585_p8 = por %p172_p5, %p171_p3  ;;  %p899_p10 = scmp.ge.s32.totalorder %s1453_s7, 1 }
  0x1b   : > { %p185_p11 = scmp.lt.s32.totalorder %s1453_s7, 5  ;;  %p1591_p12 = por %p178_p9, %p177_p7 }
  0x1c   : > { %s1838_s12 = scalar_select %p1585_p8, 1, 0 }
  0x1d   : > { %s1840_s13 = scalar_select %p1591_p12, 1, 0 }
  0x1e   : > { %1839 = sst [smem:[#allocation20_spill]] %s1838_s12  ;;  %p1595_p13 = pnand %p899_p10, %p185_p11 }
  0x1f   : > { %1841 = sst [smem:[#allocation21_spill]] %s1840_s13  ;;  %s1455_s18 = smov [#allocation9]  }
  0x20   : > { %s1843_s3 = sld [smem:[#allocation27_spill]]  ;;  %p1070_p0 = pneg %p1595_p13 }
  0x21   : > { %s201_s19 = sshll.u32 %s1455_s18, 4  ;;  %s1813_s23 = smov 64   ;;  %s202_s19 = int_to_ptr.vmem [resolvable:$true] %s201_s19 }
  0x22   : > { %p1071_p2 = pnand %p1070_p0, %p81_p1  ;;  %s1815_s26 = smov 4  }
  0x23   : > { %s34_s9 = sadd.s32 1, %s1445_s30  ;;  %s37_s15 = sadd.s32 1, %s1449_s6 }
  0x24   : > { %p35_p3 = scmp.ge.s32.totalorder %s34_s9, 2  ;;  %s67_s16 = sadd.s32 1, %s1433_s27 }
  0x25   : > { %p74_p5 = scmp.ne.s32.totalorder %s1433_s27, %s1429_s0  ;;  %p75_p7 = scmp.eq.s32.totalorder %s1453_s7, 0 }
  0x26   : > { %s199_s17 = sshll.u32 %s1843_s3, 4  ;;  %s1878_s9 = smov (%p35_p3, %s34_s9), 0  ;;  %s200_s17 = int_to_ptr.hbm [resolvable:$true] %s199_s17 }
  0x27   : > { %1073 = dma.hbm_to_vmem [thread:$0]  (!%p1071_p2), %s200_s17, 1024, %s202_s19, [#allocation8], %s1813_s23, %s1813_s23, %s1815_s26  }
  0x28   : > { %1844 = sst [smem:[#allocation22_spill]] %s1878_s9  ;;  %s1880_s15 = smov (!%p35_p3, %s37_s15), %s1449_s6 }
  0x29   : > { %s1620_s18 = ssub.s32 %s1445_s30, %s1878_s9  ;;  %p1624_p9 = por %p75_p7, %p74_p5 }
  0x2a   : > { %p39_p10 = scmp.ge.s32.totalorder %s1880_s15, 2  ;;  %p91_p11 = scmp.eq.s32.totalorder %s1620_s18, 0 }
  0x2b   : > { %s161_s19 = sadd.s32 1, %s1409_s22  ;;  %p1086_p0 = scmp.lt.s32.totalorder %s1453_s7, 4 }
  0x2c   : > { %s1882_s15 = smov (%p39_p10, %s1880_s15), 0  ;;  %s218_s23 = sand.u32 1, %s1433_s27  }
  0x2d   : > { %1846 = sst [smem:[#allocation23_spill]] %s1882_s15  ;;  %s1017_s26 = sshll.u32 %s1449_s6, 5 }
  0x2e   : > { %s62_s3 = ssub.s32 %s1449_s6, %s1882_s15  ;;  %s902_s13 = sshll.u32 %s218_s23, 6 }
  0x2f   : > { %s64_s9 = sor.u32 %s1620_s18, %s62_s3  ;;  %p159_p2 = scmp.eq.s32.totalorder %s62_s3, 0 }
  0x30   : > { %p65_p3 = scmp.eq.s32.totalorder %s64_s9, 0  ;;  %s227_s12 = sadd.s32 %s1445_s30, %s1017_s26 }
  0x31   : > { %s1639_s20 = scalar_select %p159_p2, %s1409_s22, %s161_s19  }
  0x32   : > { %s1642_s5 = scalar_select %p65_p3, %s1433_s27, %s67_s16  }
  0x33   : > { %1847 = sst [smem:[#allocation24_spill]] %s1639_s20  ;;  %s905_s29 = sshll.u32 %s227_s12, 2 }
  0x34   : > { %1848 = sst [smem:[#allocation25_spill]] %s1642_s5  ;;  %s222_s4 = scalar_lea.vmem [#allocation4], %s902_s13 }
  0x35   : > { %s232_s15 = sshll.u32 %s222_s4, 4  ;;  %s1849_s1 = sld [smem:[#allocation26_spill]]  ;;  %s233_s15 = int_to_ptr.vmem [resolvable:$true] %s232_s15 }
  0x36   : > { %p1075_p5 = pnand %p1086_p0, %p1624_p9  ;;  %s219_s16 = scalar_lea.sflag [#allocation5], %s218_s23 }
  0x37   : > { %s1458_s5 = smov 128   ;;  %s1850_s27 = smov 4  }
  0x38   : > { %s1851_s26 = smov 64   ;;  %s242_s12 = sand.u32 1, %s1453_s7  }
  0x39   : > { %s93_s13 = sadd.s32 1, %s1421_s25  ;;  %p100_p10 = scmp.ne.s32.totalorder %s1421_s25, %s1417_s24 }
  0x3a   : > { %s1661_s4 = scalar_select %p91_p11, %s1421_s25, %s93_s13  }
  0x3b   : > { %s229_s6 = scalar_lea.hbm %s1849_s1, %s905_s29  ;;  %p102_p2 = por %p100_p10, %p75_p7 }
  0x3c   : > { %s230_s19 = sshll.u32 %s229_s6, 4  ;;  %s244_s29 = sand.u32 1, %s1421_s25   ;;  %s231_s19 = int_to_ptr.hbm [resolvable:$true] %s230_s19 }
  0x3d   : > { %1077 = dma.hbm_to_vmem [thread:$0]  (!%p1075_p5), %s231_s19, 1024, %s233_s15, %s219_s16, %s1458_s5, %s1851_s26, %s1850_s27  }
  0x3e   : > { %s1018_s6 = sshll.u32 %s1445_s30, 6  ;;  %s906_s17 = sshll.u32 %s244_s29, 6 }
  0x3f   : > { %s251_s23 = scalar_lea.hbm %s1809_s2, %s1018_s6  ;;  %s246_s20 = scalar_lea.vmem [#allocation7], %s906_s17 }
  0x40   : > { %s252_s1 = sshll.u32 %s251_s23, 4  ;;  %s254_s22 = sshll.u32 %s246_s20, 4  ;;  %s253_s1 = int_to_ptr.hbm [resolvable:$true] %s252_s1  ;;  %s255_s22 = int_to_ptr.vmem [resolvable:$true] %s254_s22 }
  0x41   : > { %p1078_p9 = pnand %p1086_p0, %p102_p2  ;;  %s243_s5 = scalar_lea.sflag [#allocation8], %s242_s12 }
  0x42   : > { %266 = sbr.rel (%p1595_p13) target bundleno = 589 (0x24d), region = 40  ;;  %s268_s15 = sand.u32 (!%p1595_p13), 1, %s1429_s0  }
  0x43   : > { %1080 = dma.hbm_to_vmem [thread:$0]  (!%p1078_p9), %s253_s1, 1024, %s255_s22, %s243_s5, %s1851_s26, %s1851_s26, %s1850_s27  }
  0x44   : > { %s910_s18 = sshll.u32 (!%p1595_p13), %s268_s15, 6  ;;  %s269_s19 = scalar_lea.sflag (!%p1595_p13), [#allocation5], %s268_s15 }
  0x45   : > { %s1678_s16 = scalar_lea.vmem (!%p1595_p13), [#allocation4], %s910_s18 }
  0x47   : > { %1384 = dma.done.wait (%p1572_p4), %s269_s19, 1024  }
  0x48   : > { %1386 = vsyncadd (%p1572_p4), %s269_s19, 4294966272  ;;  %s278_s20 = sand.u32 1, %s1562_s8   ;;  %s280_s1 = sand.u32 1, %s1417_s24  }
  0x49   : > { %s911_s22 = sshll.u32 %s280_s1, 6  ;;  %s279_s27 = scalar_lea.sflag [#allocation8], %s278_s20 }
  0x4a   : > { %s1686_s14 = scalar_lea.vmem [#allocation7], %s911_s22 }
  0x4b   : > { %1388 = dma.done.wait (%p1579_p6), %s279_s27, 1024  }
  0x4c   : > { %1390 = vsyncadd (%p1579_p6), %s279_s27, 4294966272 }
  0x4d   : > { %1392 = dma.done.wait (%p81_p1), [#allocation8], 1024  }
  0x4e   : > { %1394 = vsyncadd (%p81_p1), [#allocation8], 4294966272  ;;  %s317_s10 = sand.u32 1, %s1405_s21   ;;  %p914_p4 = scmp.ne.s32.totalorder %s1437_s28, 0 }
  0x4f   : > { %s913_s26 = sshll.u32 %s317_s10, 7 }
  0x50   : > { %s1699_s12 = scalar_lea.vmem [#allocation10], %s913_s26  ;;  %326 = sbr.rel (%p914_p4) target bundleno = 102 (0x66), region = 56 }
  0x55   : > { %v1459_v0 = vmov 0.0  }
  0x56   : > { %327 = vst [vmem:[#allocation2 + $0x30] sm:$0xff] %v1459_v0 }
  0x57   : > { %328 = vst [vmem:[#allocation2] sm:$0xff] %v1459_v0 }
  0x58   : > { %329 = vst [vmem:[#allocation2 + $0x58] sm:$0xff] %v1459_v0 }
  0x59   : > { %330 = vst [vmem:[#allocation2 + $0x18] sm:$0xff] %v1459_v0 }
  0x5a   : > { %331 = vst [vmem:[#allocation2 + $0x50] sm:$0xff] %v1459_v0 }
  0x5b   : > { %332 = vst [vmem:[#allocation2 + $0x68] sm:$0xff] %v1459_v0 }
  0x5c   : > { %333 = vst [vmem:[#allocation2 + $0x8] sm:$0xff] %v1459_v0 }
  0x5d   : > { %334 = vst [vmem:[#allocation2 + $0x48] sm:$0xff] %v1459_v0 }
  0x5e   : > { %335 = vst [vmem:[#allocation2 + $0x40] sm:$0xff] %v1459_v0 }
  0x5f   : > { %336 = vst [vmem:[#allocation2 + $0x20] sm:$0xff] %v1459_v0 }
  0x60   : > { %337 = vst [vmem:[#allocation2 + $0x10] sm:$0xff] %v1459_v0 }
  0x61   : > { %338 = vst [vmem:[#allocation2 + $0x38] sm:$0xff] %v1459_v0 }
  0x62   : > { %339 = vst [vmem:[#allocation2 + $0x60] sm:$0xff] %v1459_v0 }
  0x63   : > { %340 = vst [vmem:[#allocation2 + $0x70] sm:$0xff] %v1459_v0 }
  0x64   : > { %341 = vst [vmem:[#allocation2 + $0x78] sm:$0xff] %v1459_v0 }
  0x65   : > { %342 = vst [vmem:[#allocation2 + $0x28] sm:$0xff] %v1459_v0 }
  0x66 PF: > { %v1034_v1 = vld [vmem:[#allocation9 + $0x38] sm:$0xff]  ;;  %v1033_v2 = vld [vmem:[#allocation9 + $0x30] sm:$0xff]  ;;  %v1032_v3 = vld [vmem:[#allocation9 + $0x28] sm:$0xff]  ;;  %p1011_p1 = scmp.ne.s32.totalorder %s1437_s28, 1 }
  0x67   : > { %1044 = vmatpush.bf16.msra.mxu2 %v1034_v1  ;;  %471 = vmatpush.bf16.msra.mxu0 %v1034_v1  ;;  %v1031_v4 = vld [vmem:[#allocation9 + $0x20] sm:$0xff]  ;;  %v1030_v5 = vld [vmem:[#allocation9 + $0x18] sm:$0xff]  ;;  %v1029_v6 = vld [vmem:[#allocation9 + $0x10] sm:$0xff]  ;;  %s1852_s13 = sld [smem:[#allocation28_spill]] (!%p1011_p1) }
  0x68   : > { %v1028_v7 = vld [vmem:[#allocation9 + $0x8] sm:$0xff]  ;;  %v1027_v8 = vld [vmem:[#allocation9] sm:$0xff]  ;;  %v1025_v13 = vld [vmem:[%s1686_s14 + $0x30] sm:$0xff]  ;;  %s729_s29 = sld [smem:[#allocation3]] (!%p1011_p1) }
  0x69   : > { %v1023_v9 = vld [vmem:[%s1686_s14 + $0x20] sm:$0xff]  ;;  %v1024_v11 = vld [vmem:[%s1686_s14 + $0x28] sm:$0xff]  ;;  %v1021_v14 = vld [vmem:[%s1686_s14 + $0x10] sm:$0xff] }
  0x6a   : > { %v1019_v10 = vld [vmem:[%s1686_s14] sm:$0xff]  ;;  %v1020_v12 = vld [vmem:[%s1686_s14 + $0x8] sm:$0xff]  ;;  %v1026_v15 = vld [vmem:[%s1686_s14 + $0x38] sm:$0xff] }
  0x6b   : > { %1045 = vmatpush.bf16.msra.mxu2 %v1033_v2  ;;  %472 = vmatpush.bf16.msra.mxu0 %v1033_v2  ;;  %v1022_v16 = vld [vmem:[%s1686_s14 + $0x18] sm:$0xff]  ;;  %v1035_v41 = vld [vmem:[%s1678_s16] sm:$0xff]  ;;  %v1036_v43 = vld [vmem:[%s1678_s16 + $0x8] sm:$0xff] }
  0x6c   : > { %v1039_v42 = vld [vmem:[%s1678_s16 + $0x20] sm:$0xff]  ;;  %v1040_v44 = vld [vmem:[%s1678_s16 + $0x28] sm:$0xff]  ;;  %v1037_v45 = vld [vmem:[%s1678_s16 + $0x10] sm:$0xff] }
  0x6d   : > { %v1041_v46 = vld [vmem:[%s1678_s16 + $0x30] sm:$0xff]  ;;  %v1038_v47 = vld [vmem:[%s1678_s16 + $0x18] sm:$0xff]  ;;  %v528_v52 = vld [vmem:[#allocation2 + $0x40] sm:$0xff] }
  0x6e   : > { %v1042_v48 = vld [vmem:[%s1678_s16 + $0x38] sm:$0xff]  ;;  %v520_v49 = vld [vmem:[#allocation2 + $0x30] sm:$0xff]  ;;  %v521_v54 = vld [vmem:[#allocation2] sm:$0xff] }
  0x6f   : > { %1046 = vmatpush.bf16.msra.mxu2 %v1032_v3  ;;  %473 = vmatpush.bf16.msra.mxu0 %v1032_v3  ;;  %v529_v58 = vld [vmem:[#allocation2 + $0x20] sm:$0xff]  ;;  %v522_v60 = vld [vmem:[#allocation2 + $0x58] sm:$0xff]  ;;  %v530_v0 = vld [vmem:[#allocation2 + $0x10] sm:$0xff] }
  0x70   : > { %v523_v2 = vld [vmem:[#allocation2 + $0x18] sm:$0xff] }
  0x73   : > { %1047 = vmatpush.bf16.msra.mxu2 %v1031_v4  ;;  %474 = vmatpush.bf16.msra.mxu0 %v1031_v4 }
  0x77   : > { %1048 = vmatpush.bf16.msra.mxu2 %v1030_v5  ;;  %475 = vmatpush.bf16.msra.mxu0 %v1030_v5 }
  0x7b   : > { %1049 = vmatpush.bf16.msra.mxu2 %v1029_v6  ;;  %476 = vmatpush.bf16.msra.mxu0 %v1029_v6  ;;  %v531_v6 = vld [vmem:[#allocation2 + $0x38] sm:$0xff] }
  0x7f   : > { %1050 = vmatpush.bf16.msra.mxu2 %v1028_v7  ;;  %477 = vmatpush.bf16.msra.mxu0 %v1028_v7 }
  0x83   : > { %1051 = vmatpush.bf16.msra.mxu2 %v1027_v8  ;;  %478 = vmatpush.bf16.msra.mxu0 %v1027_v8  ;;  %v524_v8 = vld [vmem:[#allocation2 + $0x50] sm:$0xff] }
  0x86   : > { %499 = vmatmul.bf16.vlgmr.msra.gmra.mxu2 %v1023_v9  ;;  %479 = vmatmul.bf16.vlgmr.msra.gmra.mxu0 %v1019_v10 }
  0x96   : > { %504 = vmatmul.bf16.gmra.mxu2 %v1024_v11  ;;  %484 = vmatmul.bf16.gmra.mxu0 %v1020_v12  ;;  %v532_v12 = vld [vmem:[#allocation2 + $0x60] sm:$0xff] }
  0xa6   : > { %509 = vmatmul.bf16.gmra.mxu2 %v1025_v13  ;;  %489 = vmatmul.bf16.gmra.mxu0 %v1021_v14  ;;  %v525_v14 = vld [vmem:[#allocation2 + $0x68] sm:$0xff] }
  0xb6   : > { %514 = vmatmul.bf16.gmra.mxu2 %v1026_v15  ;;  %494 = vmatmul.bf16.gmra.mxu0 %v1022_v16 }
 0x103   : > { %v480_v18 = vpop.f32.mrf.mxu0 }
 0x109   : > { %v500_v17 = vpop.f32.mrf.mxu2 }
 0x10b   : > { %v482_v20 = vpop.f32.mrf.mxu0 }
 0x10c   : > { %v552_v40 = vpack.c.bf16 %v482_v20, %v480_v18  ;;  %v533_v18 = vld [vmem:[#allocation2 + $0x70] sm:$0xff]  ;;  %v526_v20 = vld [vmem:[#allocation2 + $0x8] sm:$0xff] }
 0x111   : > { %v502_v19 = vpop.f32.mrf.mxu2 }
 0x112   : > { %v556_v35 = vpack.c.bf16 %v502_v19, %v500_v17 }
 0x113   : > { %v485_v22 = vpop.f32.mrf.mxu0 }
 0x119   : > { %v505_v21 = vpop.f32.mrf.mxu2 }
 0x11b   : > { %v487_v24 = vpop.f32.mrf.mxu0 }
 0x11c   : > { %v553_v39 = vpack.c.bf16 %v487_v24, %v485_v22  ;;  %v534_v24 = vld [vmem:[#allocation2 + $0x78] sm:$0xff] }
 0x121   : > { %v507_v23 = vpop.f32.mrf.mxu2 }
 0x122   : > { %v557_v34 = vpack.c.bf16 %v507_v23, %v505_v21 }
 0x123   : > { %v490_v26 = vpop.f32.mrf.mxu0 }
 0x129   : > { %v510_v25 = vpop.f32.mrf.mxu2 }
 0x12b   : > { %v492_v29 = vpop.f32.mrf.mxu0 }
 0x12c   : > { %v554_v38 = vpack.c.bf16 %v492_v29, %v490_v26  ;;  %v527_v26 = vld [vmem:[#allocation2 + $0x48] sm:$0xff] }
 0x131   : > { %v512_v27 = vpop.f32.mrf.mxu2 }
 0x132   : > { %v558_v33 = vpack.c.bf16 %v512_v27, %v510_v25 }
 0x133   : > { %v495_v32 = vpop.f32.mrf.mxu0 }
 0x139   : > { %v515_v28 = vpop.f32.mrf.mxu2 }
 0x13b   : > { %v497_v36 = vpop.f32.mrf.mxu0 }
 0x13c   : > { %v555_v37 = vpack.c.bf16 %v497_v36, %v495_v32 }
 0x141   : > { %v517_v30 = vpop.f32.mrf.mxu2 }
 0x142   : > { %v559_v31 = vpack.c.bf16 %v517_v30, %v515_v28  ;;  %v535_v30 = vld [vmem:[#allocation2 + $0x28] sm:$0xff] }
 0x144   : > { %608 = vmatpush.bf16.msra.mxu1 %v559_v31  ;;  %1052 = vmatpush.bf16.msra.mxu3 %v559_v31 }
 0x148   : > { %609 = vmatpush.bf16.msra.mxu1 %v558_v33  ;;  %1053 = vmatpush.bf16.msra.mxu3 %v558_v33 }
 0x14c   : > { %610 = vmatpush.bf16.msra.mxu1 %v557_v34  ;;  %1054 = vmatpush.bf16.msra.mxu3 %v557_v34 }
 0x150   : > { %611 = vmatpush.bf16.msra.mxu1 %v556_v35  ;;  %1055 = vmatpush.bf16.msra.mxu3 %v556_v35 }
 0x154   : > { %612 = vmatpush.bf16.msra.mxu1 %v555_v37  ;;  %1056 = vmatpush.bf16.msra.mxu3 %v555_v37 }
 0x158   : > { %613 = vmatpush.bf16.msra.mxu1 %v554_v38  ;;  %1057 = vmatpush.bf16.msra.mxu3 %v554_v38 }
 0x15c   : > { %614 = vmatpush.bf16.msra.mxu1 %v553_v39  ;;  %1058 = vmatpush.bf16.msra.mxu3 %v553_v39 }
 0x160   : > { %615 = vmatpush.bf16.msra.mxu1 %v552_v40  ;;  %1059 = vmatpush.bf16.msra.mxu3 %v552_v40 }
 0x163   : > { %616 = vmatmul.bf16.vlgmr.msra.gmra.mxu1 %v1035_v41  ;;  %636 = vmatmul.bf16.vlgmr.msra.gmra.mxu3 %v1039_v42 }
 0x173   : > { %621 = vmatmul.bf16.gmra.mxu1 %v1036_v43  ;;  %641 = vmatmul.bf16.gmra.mxu3 %v1040_v44 }
 0x183   : > { %626 = vmatmul.bf16.gmra.mxu1 %v1037_v45  ;;  %646 = vmatmul.bf16.gmra.mxu3 %v1041_v46 }
 0x193   : > { %631 = vmatmul.bf16.gmra.mxu1 %v1038_v47  ;;  %651 = vmatmul.bf16.gmra.mxu3 %v1042_v48 }
 0x1e0   : > { %v617_v50 = vpop.f32.mrf.mxu1 }
 0x1e1   : > { %v657_v51 = vadd.f32 %v617_v50, %v520_v49 }
 0x1e3   : > { %673 = vst [vmem:[#allocation2 + $0x30] sm:$0xff] %v657_v51 }
 0x1e6   : > { %v637_v53 = vpop.f32.mrf.mxu3 }
 0x1e7   : > { %v665_v55 = vadd.f32 %v637_v53, %v528_v52 }
 0x1e8   : > { %v619_v56 = vpop.f32.mrf.mxu1 }
 0x1e9   : > { %681 = vst [vmem:[#allocation2 + $0x40] sm:$0xff] %v665_v55  ;;  %v658_v57 = vadd.f32 %v619_v56, %v521_v54 }
 0x1eb   : > { %674 = vst [vmem:[#allocation2] sm:$0xff] %v658_v57 }
 0x1ee   : > { %v639_v59 = vpop.f32.mrf.mxu3 }
 0x1ef   : > { %v666_v61 = vadd.f32 %v639_v59, %v529_v58 }
 0x1f0   : > { %v622_v62 = vpop.f32.mrf.mxu1 }
 0x1f1   : > { %682 = vst [vmem:[#allocation2 + $0x20] sm:$0xff] %v666_v61  ;;  %v659_v63 = vadd.f32 %v622_v62, %v522_v60 }
 0x1f3   : > { %675 = vst [vmem:[#allocation2 + $0x58] sm:$0xff] %v659_v63 }
 0x1f6   : > { %v642_v1 = vpop.f32.mrf.mxu3 }
 0x1f7   : > { %v667_v3 = vadd.f32 %v642_v1, %v530_v0 }
 0x1f8   : > { %v624_v4 = vpop.f32.mrf.mxu1 }
 0x1f9   : > { %683 = vst [vmem:[#allocation2 + $0x10] sm:$0xff] %v667_v3  ;;  %v660_v5 = vadd.f32 %v624_v4, %v523_v2 }
 0x1fb   : > { %676 = vst [vmem:[#allocation2 + $0x18] sm:$0xff] %v660_v5 }
 0x1fe   : > { %v644_v7 = vpop.f32.mrf.mxu3 }
 0x1ff   : > { %v668_v9 = vadd.f32 %v644_v7, %v531_v6 }
 0x200   : > { %v627_v10 = vpop.f32.mrf.mxu1 }
 0x201   : > { %684 = vst [vmem:[#allocation2 + $0x38] sm:$0xff] %v668_v9  ;;  %v661_v11 = vadd.f32 %v627_v10, %v524_v8 }
 0x203   : > { %677 = vst [vmem:[#allocation2 + $0x50] sm:$0xff] %v661_v11 }
 0x206   : > { %v647_v13 = vpop.f32.mrf.mxu3 }
 0x207   : > { %v669_v15 = vadd.f32 %v647_v13, %v532_v12 }
 0x208   : > { %v629_v16 = vpop.f32.mrf.mxu1 }
 0x209   : > { %685 = vst [vmem:[#allocation2 + $0x60] sm:$0xff] %v669_v15  ;;  %v662_v17 = vadd.f32 %v629_v16, %v525_v14 }
 0x20b   : > { %678 = vst [vmem:[#allocation2 + $0x68] sm:$0xff] %v662_v17 }
 0x20e   : > { %v649_v19 = vpop.f32.mrf.mxu3 }
 0x20f   : > { %v670_v21 = vadd.f32 %v649_v19, %v533_v18 }
 0x210   : > { %v632_v22 = vpop.f32.mrf.mxu1 }
 0x211   : > { %686 = vst [vmem:[#allocation2 + $0x70] sm:$0xff] %v670_v21  ;;  %v663_v23 = vadd.f32 %v632_v22, %v526_v20 }
 0x213   : > { %679 = vst [vmem:[#allocation2 + $0x8] sm:$0xff] %v663_v23 }
 0x216   : > { %v652_v25 = vpop.f32.mrf.mxu3 }
 0x217   : > { %v671_v27 = vadd.f32 %v652_v25, %v534_v24 }
 0x218   : > { %v634_v28 = vpop.f32.mrf.mxu1 }
 0x219   : > { %687 = vst [vmem:[#allocation2 + $0x78] sm:$0xff] %v671_v27  ;;  %v664_v29 = vadd.f32 %v634_v28, %v527_v26 }
 0x21b   : > { %680 = vst [vmem:[#allocation2 + $0x48] sm:$0xff] %v664_v29 }
 0x21d   : > { %692 = sbr.rel (%p1011_p1) target bundleno = 567 (0x237), region = 60 }
 0x21e   : > { %v654_v31 = vpop.f32.mrf.mxu3 }
 0x21f   : > { %v672_v32 = vadd.f32 %v654_v31, %v535_v30 }
 0x221   : > { %688 = vst [vmem:[#allocation2 + $0x28] sm:$0xff] %v672_v32 }
 0x222   : > { %v1208_v33 = vld [vmem:[%s1852_s13] ss:$0 sm:$0xff]  ;;  %v693_v34 = vld [vmem:[#allocation2 + $0x30] sm:$0xff]  ;;  %v695_v36 = vld [vmem:[#allocation2 + $0x58] sm:$0xff]  ;;  %v730_v47 = vstv %s729_s29 }
 0x223   : > { %v694_v35 = vld [vmem:[#allocation2] sm:$0xff]  ;;  %v696_v37 = vld [vmem:[#allocation2 + $0x18] sm:$0xff]  ;;  %v697_v38 = vld [vmem:[#allocation2 + $0x50] sm:$0xff]  ;;  %v713_v39 = vadd.f32 %v1208_v33, %v693_v34  ;;  %v715_v41 = vadd.f32 %v1208_v33, %v695_v36 }
 0x224   : > { %v714_v40 = vadd.f32 %v1208_v33, %v694_v35  ;;  %v698_v42 = vld [vmem:[#allocation2 + $0x68] sm:$0xff]  ;;  %v716_v43 = vadd.f32 %v1208_v33, %v696_v37  ;;  %v717_v45 = vadd.f32 %v1208_v33, %v697_v38  ;;  %v701_v49 = vld [vmem:[#allocation2 + $0x40] sm:$0xff]  ;;  %v703_v57 = vld [vmem:[#allocation2 + $0x10] sm:$0xff] }
 0x225   : > { %v699_v44 = vld [vmem:[#allocation2 + $0x8] sm:$0xff]  ;;  %v718_v48 = vadd.f32 %v1208_v33, %v698_v42  ;;  %v731_v50 = vmul.f32 %v730_v47, %v713_v39  ;;  %v733_v52 = vmul.f32 %v730_v47, %v715_v41  ;;  %v702_v54 = vld [vmem:[#allocation2 + $0x20] sm:$0xff]  ;;  %v721_v59 = vadd.f32 %v1208_v33, %v701_v49  ;;  %v704_v60 = vld [vmem:[#allocation2 + $0x38] sm:$0xff] }
 0x226   : > { %v700_v46 = vld [vmem:[#allocation2 + $0x48] sm:$0xff]  ;;  %v732_v51 = vmul.f32 %v730_v47, %v714_v40  ;;  %v719_v53 = vadd.f32 %v1208_v33, %v699_v44  ;;  %v734_v55 = vmul.f32 %v730_v47, %v716_v43  ;;  %v735_v58 = vmul.f32 %v730_v47, %v717_v45  ;;  %v705_v63 = vld [vmem:[#allocation2 + $0x60] sm:$0xff]  ;;  %v706_v2 = vld [vmem:[#allocation2 + $0x70] sm:$0xff] }
 0x227   : > { %v720_v56 = vadd.f32 %v1208_v33, %v700_v46  ;;  %747 = vst [vmem:[%s1699_s12] sm:$0xff] %v731_v50  ;;  %v736_v61 = vmul.f32 %v730_v47, %v718_v48  ;;  %v722_v62 = vadd.f32 %v1208_v33, %v702_v54  ;;  %v723_v1 = vadd.f32 %v1208_v33, %v703_v57  ;;  %v707_v5 = vld [vmem:[#allocation2 + $0x78] sm:$0xff] }
 0x228   : > { %748 = vst [vmem:[%s1699_s12 + $0x8] sm:$0xff] %v732_v51  ;;  %v737_v0 = vmul.f32 %v730_v47, %v719_v53  ;;  %v724_v4 = vadd.f32 %v1208_v33, %v704_v60  ;;  %v739_v6 = vmul.f32 %v730_v47, %v721_v59  ;;  %v725_v7 = vadd.f32 %v1208_v33, %v705_v63  ;;  %v708_v8 = vld [vmem:[#allocation2 + $0x28] sm:$0xff] }
 0x229   : > { %749 = vst [vmem:[%s1699_s12 + $0x10] sm:$0xff] %v733_v52  ;;  %v738_v3 = vmul.f32 %v730_v47, %v720_v56  ;;  %v740_v9 = vmul.f32 %v730_v47, %v722_v62  ;;  %v726_v10 = vadd.f32 %v1208_v33, %v706_v2  ;;  %v741_v11 = vmul.f32 %v730_v47, %v723_v1 }
 0x22a   : > { %750 = vst [vmem:[%s1699_s12 + $0x18] sm:$0xff] %v734_v55  ;;  %v727_v12 = vadd.f32 %v1208_v33, %v707_v5  ;;  %v742_v13 = vmul.f32 %v730_v47, %v724_v4  ;;  %v728_v14 = vadd.f32 %v1208_v33, %v708_v8  ;;  %v743_v15 = vmul.f32 %v730_v47, %v725_v7 }
 0x22b   : > { %751 = vst [vmem:[%s1699_s12 + $0x20] sm:$0xff] %v735_v58  ;;  %v744_v16 = vmul.f32 %v730_v47, %v726_v10 }
 0x22c   : > { %752 = vst [vmem:[%s1699_s12 + $0x28] sm:$0xff] %v736_v61  ;;  %v745_v17 = vmul.f32 %v730_v47, %v727_v12  ;;  %v746_v18 = vmul.f32 %v730_v47, %v728_v14 }
 0x22d   : > { %753 = vst [vmem:[%s1699_s12 + $0x30] sm:$0xff] %v737_v0 }
 0x22e   : > { %754 = vst [vmem:[%s1699_s12 + $0x38] sm:$0xff] %v738_v3 }
 0x22f   : > { %755 = vst [vmem:[%s1699_s12 + $0x40] sm:$0xff] %v739_v6 }
 0x230   : > { %756 = vst [vmem:[%s1699_s12 + $0x48] sm:$0xff] %v740_v9 }
 0x231   : > { %757 = vst [vmem:[%s1699_s12 + $0x50] sm:$0xff] %v741_v11 }
 0x232   : > { %758 = vst [vmem:[%s1699_s12 + $0x58] sm:$0xff] %v742_v13 }
 0x233   : > { %759 = vst [vmem:[%s1699_s12 + $0x60] sm:$0xff] %v743_v15 }
 0x234   : > { %760 = vst [vmem:[%s1699_s12 + $0x68] sm:$0xff] %v744_v16 }
 0x235   : > { %761 = vst [vmem:[%s1699_s12 + $0x70] sm:$0xff] %v745_v17 }
 0x236   : > { %762 = vst [vmem:[%s1699_s12 + $0x78] sm:$0xff] %v746_v18 }
 0x237 PF: > { %s1853_s28 = sld [smem:[#allocation18_spill]]  ;;  %s776_s18 = sshll.u32 %s1699_s12, 4  ;;  %s777_s18 = int_to_ptr.vmem [resolvable:$true] %s776_s18 }
 0x238   : > { %s1855_s23 = sld [smem:[#allocation29_spill]]  ;;  %s764_s16 = scalar_lea.sflag [#allocation6], %s317_s10 }
 0x23d   : > { %s1043_s17 = sshll.u32 %s1853_s28, 7 }
 0x23e   : > { %s1856_s5 = smov %s1855_s23  ;;  %s775_s15 = scalar_lea.hbm %s1855_s23, %s1043_s17 }
 0x23f   : > { %s778_s19 = sshll.u32 %s775_s15, 4  ;;  %s1319_s14 = scalar_lea.hbm %s1856_s5, 256  ;;  %s779_s19 = int_to_ptr.hbm [resolvable:$true] %s778_s19 }
 0x240   : > { %s1313_s20 = sshra.s32 %s779_s19, 4  ;;  %s1314_s20 = int_to_ptr.hbm [resolvable:$true] %s1313_s20 }
 0x241   : > { %s1315_s1 = scalar_lea.hbm %s1314_s20, 128  ;;  %p1320_p11 = scmp.lt.s32.totalorder %s1314_s20, %s1856_s5 }
 0x242   : > { %p1316_p6 = scmp.ne.s32.totalorder %s1314_s20, %s1315_s1  ;;  %p1321_p0 = scmp.lt.s32.totalorder %s1319_s14, %s1315_s1 }
 0x244   : > { %p1317_p13 = pnand %p1316_p6, %p1585_p8  ;;  %p1322_p3 = por %p1321_p0, %p1320_p11 }
 0x246   : > { %p1318_p7 = pneg %p1317_p13 }
 0x248   : > { %p1323_p5 = pnand %p1322_p3, %p1318_p7 }
 0x24a   : > { %1326 = shalt.err (!%p1323_p5)
}
 0x24b   : > { %s1460_s10 = smov 128   ;;  %s1461_s12 = smov 8  }
 0x24c   : > { %1068 = dma.vmem_to_hbm [thread:$0]  (%p1585_p8), %s777_s18, 2048, %s779_s19, %s764_s16, %s1460_s10, %s1460_s10, %s1461_s12  }
 0x24d PF: > { %s1857_s11 = sld [smem:[#allocation15_spill]]  ;;  %p1088_p10 = scmp.ge.s32.totalorder %s1453_s7, 2 }
 0x24f   : > { %p1082_p2 = pnand %p1088_p10, %p1591_p12 }
 0x251   : > { %p1083_p9 = pneg %p1082_p2 }
 0x253   : > { %s793_s29 = sand.u32 1, %s1857_s11  }
 0x254   : > { %s794_s28 = scalar_lea.sflag [#allocation6], %s793_s29 }
 0x255   : > { %1396 = dma.done.wait (%p1083_p9), %s794_s28, 2048  }
 0x256   : > { %1398 = vsyncadd (%p1083_p9), %s794_s28, 4294965248  ;;  %s25_s7 = sadd.s32 1, %s1453_s7   ;;  %s1860_s6 = sld [smem:[#allocation16_spill]] }
 0x257   : > { %p1760_p4 = scmp.ge.s32.totalorder %s25_s7, 6   ;;  %s1861_s22 = sld [smem:[#allocation24_spill]] }
 0x258   : > { %s1862_s3 = sld [smem:[#allocation17_spill]]  ;;  %s1867_s20 = smov %s1405_s21 }
 0x259   : > { %s1863_s27 = sld [smem:[#allocation25_spill]]  ;;  %s1869_s23 = smov %s1417_s24 }
 0x25a   : > { %s1864_s29 = sld [smem:[#allocation19_spill]]  ;;  %s1870_s24 = smov %s1421_s25 }
 0x25b   : > { %s1865_s9 = sld [smem:[#allocation22_spill]]  ;;  %s1871_s25 = smov %s1661_s4 }
 0x25c   : > { %s1866_s15 = sld [smem:[#allocation23_spill]]  ;;  %s1868_s21 = smov %s1860_s6 }
 0x25d   : > { %s1872_s26 = smov %s1429_s0  ;;  %s1874_s28 = smov %s1445_s30 }
 0x25e   : > { %s1873_s0 = smov %s1862_s3  ;;  %24 = sbr.rel (!%p1760_p4) target bundleno = 18 (0x12), region = 110 }
 0x261   : > { %s1875_s30 = smov %s1865_s9 }
 0x262   : > { %s1876_s6 = smov %s1866_s15 }
 0x263   :  { %800 = vsyncpa [#allocation5], 1 }
 0x264   :  { %802 = vsyncpa [#allocation5 + $0x1], 1 }
 0x265   :  { %803 = vsyncpa [#allocation8], 1 }
 0x266   :  { %805 = vsyncpa [#allocation8 + $0x1], 1 }
 0x267   :  { %806 = vsyncpa [#allocation6], 1 }
 0x268   :  { %808 = vsyncpa [#allocation6 + $0x1], 1 }

</bundles_post_ra>
